<compile_context>
chip_gen: v7x
topology: tpu7x:2x2x1
jax: 0.10.0
libtpu: 0.0.40
codegen_flags: <defaults>
</compile_context>

<pallas_src>
import functools

import jax
import jax.numpy as jnp
from jax.experimental import pallas as pl
from jax.experimental.pallas import tpu as pltpu


def _sqmod_kernel(x_ref, o_ref, *, C):
    x = x_ref[...]          # (Tt, 2*C): each row is [x[b,2t,:], x[b,2t+1,:]]
    even = x[:, :C]
    odd = x[:, C:]
    # 2 * mean(even^2, odd^2) == even^2 + odd^2
    o_ref[...] = even * even + odd * odd


def squared_modulus(x, *, block_rows=1024):
    """x: (B, T, C) -> (B, T//2, C), matching SquaredModulus.forward."""
    B, T, C = x.shape
    assert T % 2 == 0, "time axis must be even (AvgPool1d k=2, s=2, no padding)"
    N = B * (T // 2)
    itemsize = jnp.dtype(x.dtype).itemsize

    # Free, contiguous row-major view: input row r = (even, odd) time pair.
    x2 = x.reshape(N, 2 * C)

    # Row tile: multiple of the sublane packing (8 f32 / 16 bf16 / 32 int8),
    # capped so the double-buffered in+out working set stays <~16 MiB even on
    # v7x (64 MiB physical VMEM).
    sub = max(8, 32 // itemsize)
    vmem_budget = 16 << 20
    rows_cap = max(sub, vmem_budget // (2 * 3 * C * itemsize))
    Tt = min(block_rows, N, rows_cap)
    if Tt >= sub:
        Tt = (Tt // sub) * sub
    else:
        Tt = N  # full-extent block is always legal

    grid = (pl.cdiv(N, Tt),)
    in_tile = Tt * 2 * C * itemsize
    out_tile = Tt * C * itemsize
    vmem_limit = int(min(64 << 20, max(4 << 20, 3 * (in_tile + out_tile))))

    out2 = pl.pallas_call(
        functools.partial(_sqmod_kernel, C=C),
        out_shape=jax.ShapeDtypeStruct((N, C), x.dtype),
        grid_spec=pl.GridSpec(
            grid=grid,
            in_specs=[pl.BlockSpec((Tt, 2 * C), lambda r: (r, 0))],
            out_specs=pl.BlockSpec((Tt, C), lambda r: (r, 0)),
        ),
        compiler_params=pltpu.CompilerParams(
            dimension_semantics=("parallel",),
            vmem_limit_bytes=vmem_limit,
        ),
    )(x2)

    # NOTE: with LEAF's default C=40 the output lane width is <128 so stores
    # are partially masked; when C is a multiple of 128 this layout is fully
    # lane-dense.  (Mathematically correct either way.)
    return out2.reshape(B, T // 2, C)


if __name__ == "__main__":
    # Small shapes: batch=2, seq(T)=16, channels=32
    key = jax.random.PRNGKey(0)
    x = jax.random.normal(key, (2, 16, 32), dtype=jnp.float32)

    out = squared_modulus(x)
    out = jax.block_until_ready(out)

    # Pure-JAX reference (same math as the PyTorch module).
    xt = jnp.swapaxes(x, 1, 2)                          # (B, C, T)
    pooled = (xt ** 2).reshape(2, 32, 8, 2).mean(-1)    # AvgPool1d(k=2, s=2)
    ref = jnp.swapaxes(2.0 * pooled, 1, 2)              # (B, T//2, C)

    assert out.shape == (2, 8, 32)
    assert jnp.allclose(out, ref, atol=1e-5, rtol=1e-5)
    print("KERNEL_OK")
</pallas_src>

<mosaic_0001>
module attributes {stable_mosaic.version = 11 : i64} {
  func.func @_sqmod_kernel(%arg0: i32, %arg1: memref<16x64xf32, #tpu.memory_space<vmem>>, %arg2: memref<16x32xf32, #tpu.memory_space<vmem>>) attributes {dimension_semantics = [#tpu.dimension_semantics<parallel>], iteration_bounds = array<i64: 1>, scalar_prefetch = 0 : i64, scratch_operands = 0 : i64, tpu.core_type = #tpu.core_type<tc>, window_params = [{transform_indices = @transform_0, window_bounds = array<i64: 16, 64>}, {transform_indices = @transform_1, window_bounds = array<i64: 16, 32>}]} {
    %c0 = arith.constant 0 : index
    %c0_0 = arith.constant 0 : index
    %0 = vector.load %arg1[%c0, %c0_0] : memref<16x64xf32, #tpu.memory_space<vmem>>, vector<16x64xf32>
    %1 = vector.extract_strided_slice %0 {offsets = [0, 0], sizes = [16, 32], strides = [1, 1]} : vector<16x64xf32> to vector<16x32xf32>
    %2 = vector.extract_strided_slice %0 {offsets = [0, 32], sizes = [16, 32], strides = [1, 1]} : vector<16x64xf32> to vector<16x32xf32>
    %3 = arith.mulf %1, %1 : vector<16x32xf32>
    %4 = arith.mulf %2, %2 : vector<16x32xf32>
    %5 = arith.addf %3, %4 : vector<16x32xf32>
    %c0_1 = arith.constant 0 : index
    %c0_2 = arith.constant 0 : index
    %6 = vector.load %arg2[%c0_1, %c0_2] : memref<16x32xf32, #tpu.memory_space<vmem>>, vector<16x32xf32>
    tpu.vector_store %arg2[%c0_1, %c0_2], %5 {strides = array<i32>} : memref<16x32xf32, #tpu.memory_space<vmem>>, vector<16x32xf32>,
    return
  }
  func.func @transform_0(%arg0: i32) -> (i32, i32) {
    %c0_i32 = arith.constant 0 : i32
    %c0_i32_0 = arith.constant 0 : i32
    return %arg0, %c0_i32 : i32, i32
  }
  func.func @transform_1(%arg0: i32) -> (i32, i32) {
    %c0_i32 = arith.constant 0 : i32
    %c0_i32_0 = arith.constant 0 : i32
    return %arg0, %c0_i32 : i32, i32
  }
}

</mosaic_0001>

<bundles_post_ra>
// kernel: tpu_custom_call.1
= control target key start
LH: loop header
LB: loop body
LE: loop exit
PB: predicated region body
PF: predicated region fallthrough
CT: control target
= control target key end

     0   :  { %6 = vsyncpa [#allocation3], 0  ;;  %s155_s0 = inlined_call_operand.hbm [shape: f32[16,64], index: 0, kind: input, shape index: {}]   ;;  %s156_s1 = inlined_call_operand.hbm [shape: f32[16,32], index: 1, kind: output, shape index: {}]  }
   0x1   :  { %7 = vsyncpa [#allocation4], 0  ;;  %s110_s6 = smov [#allocation2]   ;;  %s62_s10 = scalar_lea.hbm %s155_s0, 256 }
   0x2   :  { %s13_s7 = sshll.u32 %s110_s6, 4  ;;  %p63_p0 = scmp.ne.s32.totalorder %s155_s0, %s62_s10  ;;  %s14_s7 = int_to_ptr.vmem [resolvable:$true] %s13_s7 }
   0x3   :  { %p66_p1 = scmp.lt.u32.totalorder %s62_s10, %s155_s0 }
   0x5   :  { %p68_p2 = pnand %p66_p1, %p63_p0 }
   0x7   :  { %71 = shalt.err (!%p68_p2)
}
   0x8   :  { %s72_s15 = scalar_lea.vmem %s14_s7, 256  ;;  %p77_p4 = scmp.lt.s32.totalorder %s14_s7, %s14_s7 }
   0x9   :  { %p73_p3 = scmp.ne.s32.totalorder %s14_s7, %s72_s15  ;;  %p78_p5 = scmp.lt.s32.totalorder %s72_s15, %s72_s15 }
   0xb   :  { %p79_p6 = por %p78_p5, %p77_p4 }
   0xd   :  { %p80_p7 = pnand %p79_p6, %p73_p3 }
   0xf   :  { %83 = shalt.err (!%p80_p7)
}
  0x10   :  { %s111_s16 = smov 128   ;;  %s112_s17 = smov 8  }
  0x11   :  { %19 = dma.hbm_to_vmem [thread:$0]  %s155_s0, 256, %s14_s7, [#allocation3], %s111_s16, %s111_s16, %s112_s17  }
  0x12   :  { %106 = dma.done.wait [#allocation3], 256  }
  0x13   :  { %107 = vsyncadd [#allocation3], 4294967040  ;;  %v23_v0 = vld [vmem:[#allocation2] sm:$0xff]  ;;  %v24_v1 = vld [vmem:[#allocation2 + $0x8] sm:$0xff]  ;;  %s113_s20 = smov 96   ;;  %vm37_vm0 = vcmask 261120  }
  0x14   :  { %v25_v2 = vmul.f32 %v23_v0, %v23_v0  ;;  %v26_v3 = vmul.f32 %v24_v1, %v24_v1  ;;  %s114_s21 = smov [#allocation5]  }
  0x15   :  { %s45_s22 = sshll.u32 %s114_s21, 4  ;;  %s46_s22 = int_to_ptr.vmem [resolvable:$true] %s45_s22 }
  0x16   :  { %29 = vrot.lane.b32.xlu0 %v25_v2, %s113_s20  ;;  %s84_s0 = scalar_lea.vmem %s46_s22, 256  ;;  %p89_p9 = scmp.lt.s32.totalorder %s46_s22, %s46_s22 }
  0x17   :  { %p85_p8 = scmp.ne.s32.totalorder %s46_s22, %s84_s0  ;;  %p90_p10 = scmp.lt.s32.totalorder %s84_s0, %s84_s0 }
  0x19   :  { %p91_p11 = por %p90_p10, %p89_p9 }
  0x1a   :  { %31 = vrot.lane.b32.xlu0 %v26_v3, %s113_s20 }
  0x1b   :  { %p92_p12 = pnand %p91_p11, %p85_p8 }
  0x88   :  { %v30_v4 = vpop.permute.xlu0 %29 }
  0x89   :  { %v35_v5 = vadd.f32 %v30_v4, %v25_v2 }
  0x8b   :  { %38 = vst.msk [vmem:[#allocation5] sm:$0xff] %vm37_vm0, %v35_v5 }
  0x8c   :  { %v32_v6 = vpop.permute.xlu0 %31 }
  0x8d   :  { %v36_v7 = vadd.f32 %v32_v6, %v26_v3 }
  0x8f   :  { %39 = vst.msk [vmem:[#allocation5 + $0x8] sm:$0xff] %vm37_vm0, %v36_v7 }
  0x90   :  { %95 = shalt.err (!%p92_p12)
}
  0x91   :  { %s96_s25 = scalar_lea.hbm %s156_s1, 256 }
  0x92   :  { %p97_p13 = scmp.ne.s32.totalorder %s156_s1, %s96_s25  ;;  %p100_p0 = scmp.lt.u32.totalorder %s96_s25, %s156_s1 }
  0x94   :  { %p102_p1 = pnand %p100_p0, %p97_p13 }
  0x96   :  { %105 = shalt.err (!%p102_p1)
}
  0x97   :  { %51 = dma.vmem_to_hbm [thread:$0]  %s46_s22, 256, %s156_s1, [#allocation4], %s111_s16, %s111_s16, %s112_s17  }
  0x98   :  { %108 = dma.done.wait [#allocation4], 256  }
  0x99   :  { %109 = vsyncadd [#allocation4], 4294967040 }
  0x9a   :  { %55 = vsyncpa [#allocation3], 1 }
  0x9b   :  { %56 = vsyncpa [#allocation4], 1 }

</bundles_post_ra>
